<compile_context>
chip_gen: v7x
topology: tpu7x:2x2x1
jax: 0.10.0
libtpu: 0.0.40
codegen_flags: <defaults>
</compile_context>

<pallas_src>
import math
import functools

import jax
import jax.numpy as jnp
from jax.experimental import pallas as pl
from jax.experimental.pallas import tpu as pltpu


def _mha_kernel(x_ref, wqkv_ref, bqkv_ref, wo_ref, bo_ref, bias_ref, o_ref,
                *, num_heads):
    # x_ref: (R, Din) with R = B*S (batch folded into rows).
    x = x_ref[...]

    # Single fused projection: q_net/k_net/v_net composed with the
    # MultiheadAttention in-projections (softmax scale already folded into the
    # q block on the host) -> (R, 3E) = q2 | k2 | v2.
    qkv = jnp.dot(x, wqkv_ref[...],
                  preferred_element_type=jnp.float32) + bqkv_ref[...]

    E = wo_ref.shape[0]
    hd = E // num_heads
    bias = bias_ref[...]          # (R, R): 0 inside a batch element, -1e30 across
    wo = wo_ref[...]              # (E, E)

    acc = None
    # Tiny static head loop (H=4): per head one (R,hd)x(hd,R) score matmul,
    # softmax, one (R,R)x(R,hd) value matmul, and an accumulated out_proj
    # slice -- no lane-axis concatenate, no per-batch loop.
    for h in range(num_heads):
        lo = h * hd
        qh = qkv[:, lo:lo + hd]                      # scale already in weights
        kh = qkv[:, E + lo:E + lo + hd]
        vh = qkv[:, 2 * E + lo:2 * E + lo + hd]

        s = jnp.dot(qh, kh.T, preferred_element_type=jnp.float32) + bias
        s = s - jnp.max(s, axis=-1, keepdims=True)
        p = jnp.exp(s)
        p = p * pl.reciprocal(jnp.sum(p, axis=-1, keepdims=True), approx=True)

        oh = jnp.dot(p, vh, preferred_element_type=jnp.float32)           # (R, hd)
        contrib = jnp.dot(oh, wo[lo:lo + hd, :],
                          preferred_element_type=jnp.float32)             # (R, E)
        acc = contrib if acc is None else acc + contrib

    o_ref[...] = (acc + bo_ref[...]).astype(o_ref.dtype)


def multihead_forward(inputs, params, num_heads):
    """inputs: (B, S, input_size) f32 -> (B, S, embedding_size) f32."""
    B, S, Din = inputs.shape
    E = params["wq"].shape[1]
    hd = E // num_heads
    scale = 1.0 / math.sqrt(hd)

    # Host-side algebraic fusion of the two projection stages (done once on
    # parameters, not activations); q|k|v concatenated -> single kernel matmul.
    wq_f = (params["wq"] @ params["wqi"]) * scale
    bq_f = (params["bq"] @ params["wqi"] + params["bqi"]) * scale
    wk_f = params["wk"] @ params["wki"]
    bk_f = params["bk"] @ params["wki"] + params["bki"]
    wv_f = params["wv"] @ params["wvi"]
    bv_f = params["bv"] @ params["wvi"] + params["bvi"]
    w_qkv = jnp.concatenate([wq_f, wk_f, wv_f], axis=1)      # (Din, 3E)
    b_qkv = jnp.concatenate([bq_f, bk_f, bv_f], axis=1)      # (1, 3E)

    R = B * S
    x2d = inputs.reshape(R, Din)

    # Block-diagonal additive attention bias: batch is folded into rows, a row
    # may only attend to keys from its own batch element.
    bid = jnp.arange(R, dtype=jnp.int32) // S
    attn_bias = jnp.where(bid[:, None] == bid[None, :], 0.0, -1e30)
    attn_bias = attn_bias.astype(jnp.float32)

    kernel = functools.partial(_mha_kernel, num_heads=num_heads)
    vmem = lambda: pl.BlockSpec(memory_space=pltpu.MemorySpace.VMEM)

    out2d = pl.pallas_call(
        kernel,
        out_shape=jax.ShapeDtypeStruct((R, E), jnp.float32),
        in_specs=[vmem() for _ in range(6)],
        out_specs=vmem(),
    )(x2d, w_qkv, b_qkv, params["wo"], params["bo"], attn_bias)
    return out2d.reshape(B, S, E)


def _init_params(key, input_size, embedding_size):
    """Deterministic synthetic parameters (torch layouts, then transposed)."""
    ks = jax.random.split(key, 10)
    E, Din = embedding_size, input_size

    def lin(k, out_dim, in_dim):
        kw, kb = jax.random.split(k)
        w = jax.random.normal(kw, (out_dim, in_dim), jnp.float32) * 0.1  # torch (out,in)
        b = jax.random.normal(kb, (out_dim,), jnp.float32) * 0.1
        return w, b

    wq_t, bq = lin(ks[0], E, Din)
    wk_t, bk = lin(ks[1], E, Din)
    wv_t, bv = lin(ks[2], E, Din)

    # nn.MultiheadAttention: in_proj_weight (3E, E), in_proj_bias (3E,)
    in_proj_w = jax.random.normal(ks[3], (3 * E, E), jnp.float32) * 0.1
    in_proj_b = jax.random.normal(ks[4], (3 * E,), jnp.float32) * 0.1
    wo_t, bo = lin(ks[5], E, E)   # out_proj

    return {
        "wq": wq_t.T, "bq": bq[None, :],
        "wk": wk_t.T, "bk": bk[None, :],
        "wv": wv_t.T, "bv": bv[None, :],
        "wqi": in_proj_w[0 * E:1 * E].T, "bqi": in_proj_b[0 * E:1 * E][None, :],
        "wki": in_proj_w[1 * E:2 * E].T, "bki": in_proj_b[1 * E:2 * E][None, :],
        "wvi": in_proj_w[2 * E:3 * E].T, "bvi": in_proj_b[2 * E:3 * E][None, :],
        "wo": wo_t.T, "bo": bo[None, :],
    }


def _reference(inputs, params, num_heads):
    """Pure-JAX reference mirroring the PyTorch forward (unfused weights)."""
    q = inputs @ params["wq"] + params["bq"]
    k = inputs @ params["wk"] + params["bk"]
    v = inputs @ params["wv"] + params["bv"]
    q2 = q @ params["wqi"] + params["bqi"]
    k2 = k @ params["wki"] + params["bki"]
    v2 = v @ params["wvi"] + params["bvi"]
    B, S, E = q2.shape
    hd = E // num_heads
    qh = q2.reshape(B, S, num_heads, hd).transpose(0, 2, 1, 3)
    kh = k2.reshape(B, S, num_heads, hd).transpose(0, 2, 1, 3)
    vh = v2.reshape(B, S, num_heads, hd).transpose(0, 2, 1, 3)
    s = jnp.einsum("bhqd,bhkd->bhqk", qh, kh) / math.sqrt(hd)
    p = jax.nn.softmax(s, axis=-1)
    o = jnp.einsum("bhqk,bhkd->bhqd", p, vh)
    o = o.transpose(0, 2, 1, 3).reshape(B, S, E)
    return o @ params["wo"] + params["bo"]


if __name__ == "__main__":
    # args = (state_size, input_size, num_heads, Seq_len, embedding_size)
    state_size, input_size, num_heads, seq_len, embedding_size = 8, 16, 4, 8, 32
    batch = 2

    key = jax.random.PRNGKey(0)
    k_state, k_in, k_par = jax.random.split(key, 3)
    state = jax.random.normal(k_state, (batch, state_size), jnp.float32)  # unused in forward
    inputs = jax.random.normal(k_in, (batch, seq_len, input_size), jnp.float32)
    params = _init_params(k_par, input_size, embedding_size)

    out = multihead_forward(inputs, params, num_heads)
    out = jax.block_until_ready(out)

    ref = _reference(inputs, params, num_heads)
    assert out.shape == (batch, seq_len, embedding_size)
    # Tolerance leaves headroom for the EUP approximate reciprocal in the
    # softmax normalisation and for the host-side weight-fusion rounding order.
    assert jnp.allclose(out, ref, atol=2e-3, rtol=2e-3)

    print("KERNEL_OK")
</pallas_src>

<mosaic_0001>
module attributes {stable_mosaic.version = 11 : i64} {
  func.func @_mha_kernel(%arg0: memref<16x16xf32, #tpu.memory_space<vmem>>, %arg1: memref<16x96xf32, #tpu.memory_space<vmem>>, %arg2: memref<1x96xf32, #tpu.memory_space<vmem>>, %arg3: memref<32x32xf32, #tpu.memory_space<vmem>>, %arg4: memref<1x32xf32, #tpu.memory_space<vmem>>, %arg5: memref<16x16xf32, #tpu.memory_space<vmem>>, %arg6: memref<16x32xf32, #tpu.memory_space<vmem>>) attributes {dimension_semantics = [], scalar_prefetch = 0 : i64, scratch_operands = 0 : i64, tpu.core_type = #tpu.core_type<tc>} {
    %c0 = arith.constant 0 : index
    %c0_0 = arith.constant 0 : index
    %0 = vector.load %arg0[%c0, %c0_0] : memref<16x16xf32, #tpu.memory_space<vmem>>, vector<16x16xf32>
    %c0_1 = arith.constant 0 : index
    %c0_2 = arith.constant 0 : index
    %1 = vector.load %arg1[%c0_1, %c0_2] : memref<16x96xf32, #tpu.memory_space<vmem>>, vector<16x96xf32>
    %cst = arith.constant dense<0.000000e+00> : vector<16x96xf32>
    %2 = tpu.matmul %0, %1, %cst {dimension_numbers = #tpu.dot_dimension_numbers<[1], [0], [0], [1], [0, 0, 1, 1], [], []>} : vector<16x16xf32>, vector<16x96xf32>, vector<16x96xf32> -> vector<16x96xf32>
    %c0_3 = arith.constant 0 : index
    %c0_4 = arith.constant 0 : index
    %3 = vector.load %arg2[%c0_3, %c0_4] : memref<1x96xf32, #tpu.memory_space<vmem>>, vector<1x96xf32>
    %4 = vector.broadcast %3 : vector<1x96xf32> to vector<16x96xf32>
    %5 = arith.addf %2, %4 : vector<16x96xf32>
    %c0_5 = arith.constant 0 : index
    %c0_6 = arith.constant 0 : index
    %6 = vector.load %arg5[%c0_5, %c0_6] : memref<16x16xf32, #tpu.memory_space<vmem>>, vector<16x16xf32>
    %c0_7 = arith.constant 0 : index
    %c0_8 = arith.constant 0 : index
    %7 = vector.load %arg3[%c0_7, %c0_8] : memref<32x32xf32, #tpu.memory_space<vmem>>, vector<32x32xf32>
    %8 = vector.extract_strided_slice %5 {offsets = [0, 0], sizes = [16, 8], strides = [1, 1]} : vector<16x96xf32> to vector<16x8xf32>
    %9 = vector.extract_strided_slice %5 {offsets = [0, 32], sizes = [16, 8], strides = [1, 1]} : vector<16x96xf32> to vector<16x8xf32>
    %10 = vector.extract_strided_slice %5 {offsets = [0, 64], sizes = [16, 8], strides = [1, 1]} : vector<16x96xf32> to vector<16x8xf32>
    %11 = tpu.transpose %9, [1, 0] : vector<16x8xf32> -> vector<8x16xf32>
    %cst_9 = arith.constant dense<0.000000e+00> : vector<16x16xf32>
    %12 = tpu.matmul %8, %11, %cst_9 {dimension_numbers = #tpu.dot_dimension_numbers<[1], [0], [0], [1], [0, 0, 1, 1], [], []>} : vector<16x8xf32>, vector<8x16xf32>, vector<16x16xf32> -> vector<16x16xf32>
    %13 = arith.addf %12, %6 : vector<16x16xf32>
    %cst_10 = arith.constant dense<0xFF800000> : vector<16xf32>
    %14 = vector.multi_reduction <maximumf>, %13, %cst_10 [1] : vector<16x16xf32> to vector<16xf32>
    %15 = vector.shape_cast %14 : vector<16xf32> to vector<16x1xf32>
    %16 = vector.broadcast %15 : vector<16x1xf32> to vector<16x16xf32>
    %17 = arith.subf %13, %16 : vector<16x16xf32>
    %18 = math.exp %17 : vector<16x16xf32>
    %cst_11 = arith.constant dense<0.000000e+00> : vector<16xf32>
    %19 = vector.multi_reduction <add>, %18, %cst_11 [1] : vector<16x16xf32> to vector<16xf32>
    %20 = vector.shape_cast %19 : vector<16xf32> to vector<16x1xf32>
    %21 = tpu.reciprocal %20 {approx = true} : vector<16x1xf32> -> vector<16x1xf32>
    %22 = vector.broadcast %21 : vector<16x1xf32> to vector<16x16xf32>
    %23 = arith.mulf %18, %22 : vector<16x16xf32>
    %cst_12 = arith.constant dense<0.000000e+00> : vector<16x8xf32>
    %24 = tpu.matmul %23, %10, %cst_12 {dimension_numbers = #tpu.dot_dimension_numbers<[1], [0], [0], [1], [0, 0, 1, 1], [], []>} : vector<16x16xf32>, vector<16x8xf32>, vector<16x8xf32> -> vector<16x8xf32>
    %25 = vector.extract_strided_slice %7 {offsets = [0, 0], sizes = [8, 32], strides = [1, 1]} : vector<32x32xf32> to vector<8x32xf32>
    %cst_13 = arith.constant dense<0.000000e+00> : vector<16x32xf32>
    %26 = tpu.matmul %24, %25, %cst_13 {dimension_numbers = #tpu.dot_dimension_numbers<[1], [0], [0], [1], [0, 0, 1, 1], [], []>} : vector<16x8xf32>, vector<8x32xf32>, vector<16x32xf32> -> vector<16x32xf32>
    %27 = vector.extract_strided_slice %5 {offsets = [0, 8], sizes = [16, 8], strides = [1, 1]} : vector<16x96xf32> to vector<16x8xf32>
    %28 = vector.extract_strided_slice %5 {offsets = [0, 40], sizes = [16, 8], strides = [1, 1]} : vector<16x96xf32> to vector<16x8xf32>
    %29 = vector.extract_strided_slice %5 {offsets = [0, 72], sizes = [16, 8], strides = [1, 1]} : vector<16x96xf32> to vector<16x8xf32>
    %30 = tpu.transpose %28, [1, 0] : vector<16x8xf32> -> vector<8x16xf32>
    %cst_14 = arith.constant dense<0.000000e+00> : vector<16x16xf32>
    %31 = tpu.matmul %27, %30, %cst_14 {dimension_numbers = #tpu.dot_dimension_numbers<[1], [0], [0], [1], [0, 0, 1, 1], [], []>} : vector<16x8xf32>, vector<8x16xf32>, vector<16x16xf32> -> vector<16x16xf32>
    %32 = arith.addf %31, %6 : vector<16x16xf32>
    %cst_15 = arith.constant dense<0xFF800000> : vector<16xf32>
    %33 = vector.multi_reduction <maximumf>, %32, %cst_15 [1] : vector<16x16xf32> to vector<16xf32>
    %34 = vector.shape_cast %33 : vector<16xf32> to vector<16x1xf32>
    %35 = vector.broadcast %34 : vector<16x1xf32> to vector<16x16xf32>
    %36 = arith.subf %32, %35 : vector<16x16xf32>
    %37 = math.exp %36 : vector<16x16xf32>
    %cst_16 = arith.constant dense<0.000000e+00> : vector<16xf32>
    %38 = vector.multi_reduction <add>, %37, %cst_16 [1] : vector<16x16xf32> to vector<16xf32>
    %39 = vector.shape_cast %38 : vector<16xf32> to vector<16x1xf32>
    %40 = tpu.reciprocal %39 {approx = true} : vector<16x1xf32> -> vector<16x1xf32>
    %41 = vector.broadcast %40 : vector<16x1xf32> to vector<16x16xf32>
    %42 = arith.mulf %37, %41 : vector<16x16xf32>
    %cst_17 = arith.constant dense<0.000000e+00> : vector<16x8xf32>
    %43 = tpu.matmul %42, %29, %cst_17 {dimension_numbers = #tpu.dot_dimension_numbers<[1], [0], [0], [1], [0, 0, 1, 1], [], []>} : vector<16x16xf32>, vector<16x8xf32>, vector<16x8xf32> -> vector<16x8xf32>
    %44 = vector.extract_strided_slice %7 {offsets = [8, 0], sizes = [8, 32], strides = [1, 1]} : vector<32x32xf32> to vector<8x32xf32>
    %cst_18 = arith.constant dense<0.000000e+00> : vector<16x32xf32>
    %45 = tpu.matmul %43, %44, %cst_18 {dimension_numbers = #tpu.dot_dimension_numbers<[1], [0], [0], [1], [0, 0, 1, 1], [], []>} : vector<16x8xf32>, vector<8x32xf32>, vector<16x32xf32> -> vector<16x32xf32>
    %46 = arith.addf %26, %45 : vector<16x32xf32>
    %47 = vector.extract_strided_slice %5 {offsets = [0, 16], sizes = [16, 8], strides = [1, 1]} : vector<16x96xf32> to vector<16x8xf32>
    %48 = vector.extract_strided_slice %5 {offsets = [0, 48], sizes = [16, 8], strides = [1, 1]} : vector<16x96xf32> to vector<16x8xf32>
    %49 = vector.extract_strided_slice %5 {offsets = [0, 80], sizes = [16, 8], strides = [1, 1]} : vector<16x96xf32> to vector<16x8xf32>
    %50 = tpu.transpose %48, [1, 0] : vector<16x8xf32> -> vector<8x16xf32>
    %cst_19 = arith.constant dense<0.000000e+00> : vector<16x16xf32>
    %51 = tpu.matmul %47, %50, %cst_19 {dimension_numbers = #tpu.dot_dimension_numbers<[1], [0], [0], [1], [0, 0, 1, 1], [], []>} : vector<16x8xf32>, vector<8x16xf32>, vector<16x16xf32> -> vector<16x16xf32>
    %52 = arith.addf %51, %6 : vector<16x16xf32>
    %cst_20 = arith.constant dense<0xFF800000> : vector<16xf32>
    %53 = vector.multi_reduction <maximumf>, %52, %cst_20 [1] : vector<16x16xf32> to vector<16xf32>
    %54 = vector.shape_cast %53 : vector<16xf32> to vector<16x1xf32>
    %55 = vector.broadcast %54 : vector<16x1xf32> to vector<16x16xf32>
    %56 = arith.subf %52, %55 : vector<16x16xf32>
    %57 = math.exp %56 : vector<16x16xf32>
    %cst_21 = arith.constant dense<0.000000e+00> : vector<16xf32>
    %58 = vector.multi_reduction <add>, %57, %cst_21 [1] : vector<16x16xf32> to vector<16xf32>
    %59 = vector.shape_cast %58 : vector<16xf32> to vector<16x1xf32>
    %60 = tpu.reciprocal %59 {approx = true} : vector<16x1xf32> -> vector<16x1xf32>
    %61 = vector.broadcast %60 : vector<16x1xf32> to vector<16x16xf32>
    %62 = arith.mulf %57, %61 : vector<16x16xf32>
    %cst_22 = arith.constant dense<0.000000e+00> : vector<16x8xf32>
    %63 = tpu.matmul %62, %49, %cst_22 {dimension_numbers = #tpu.dot_dimension_numbers<[1], [0], [0], [1], [0, 0, 1, 1], [], []>} : vector<16x16xf32>, vector<16x8xf32>, vector<16x8xf32> -> vector<16x8xf32>
    %64 = vector.extract_strided_slice %7 {offsets = [16, 0], sizes = [8, 32], strides = [1, 1]} : vector<32x32xf32> to vector<8x32xf32>
    %cst_23 = arith.constant dense<0.000000e+00> : vector<16x32xf32>
    %65 = tpu.matmul %63, %64, %cst_23 {dimension_numbers = #tpu.dot_dimension_numbers<[1], [0], [0], [1], [0, 0, 1, 1], [], []>} : vector<16x8xf32>, vector<8x32xf32>, vector<16x32xf32> -> vector<16x32xf32>
    %66 = arith.addf %46, %65 : vector<16x32xf32>
    %67 = vector.extract_strided_slice %5 {offsets = [0, 24], sizes = [16, 8], strides = [1, 1]} : vector<16x96xf32> to vector<16x8xf32>
    %68 = vector.extract_strided_slice %5 {offsets = [0, 56], sizes = [16, 8], strides = [1, 1]} : vector<16x96xf32> to vector<16x8xf32>
    %69 = vector.extract_strided_slice %5 {offsets = [0, 88], sizes = [16, 8], strides = [1, 1]} : vector<16x96xf32> to vector<16x8xf32>
    %70 = tpu.transpose %68, [1, 0] : vector<16x8xf32> -> vector<8x16xf32>
    %cst_24 = arith.constant dense<0.000000e+00> : vector<16x16xf32>
    %71 = tpu.matmul %67, %70, %cst_24 {dimension_numbers = #tpu.dot_dimension_numbers<[1], [0], [0], [1], [0, 0, 1, 1], [], []>} : vector<16x8xf32>, vector<8x16xf32>, vector<16x16xf32> -> vector<16x16xf32>
    %72 = arith.addf %71, %6 : vector<16x16xf32>
    %cst_25 = arith.constant dense<0xFF800000> : vector<16xf32>
    %73 = vector.multi_reduction <maximumf>, %72, %cst_25 [1] : vector<16x16xf32> to vector<16xf32>
    %74 = vector.shape_cast %73 : vector<16xf32> to vector<16x1xf32>
    %75 = vector.broadcast %74 : vector<16x1xf32> to vector<16x16xf32>
    %76 = arith.subf %72, %75 : vector<16x16xf32>
    %77 = math.exp %76 : vector<16x16xf32>
    %cst_26 = arith.constant dense<0.000000e+00> : vector<16xf32>
    %78 = vector.multi_reduction <add>, %77, %cst_26 [1] : vector<16x16xf32> to vector<16xf32>
    %79 = vector.shape_cast %78 : vector<16xf32> to vector<16x1xf32>
    %80 = tpu.reciprocal %79 {approx = true} : vector<16x1xf32> -> vector<16x1xf32>
    %81 = vector.broadcast %80 : vector<16x1xf32> to vector<16x16xf32>
    %82 = arith.mulf %77, %81 : vector<16x16xf32>
    %cst_27 = arith.constant dense<0.000000e+00> : vector<16x8xf32>
    %83 = tpu.matmul %82, %69, %cst_27 {dimension_numbers = #tpu.dot_dimension_numbers<[1], [0], [0], [1], [0, 0, 1, 1], [], []>} : vector<16x16xf32>, vector<16x8xf32>, vector<16x8xf32> -> vector<16x8xf32>
    %84 = vector.extract_strided_slice %7 {offsets = [24, 0], sizes = [8, 32], strides = [1, 1]} : vector<32x32xf32> to vector<8x32xf32>
    %cst_28 = arith.constant dense<0.000000e+00> : vector<16x32xf32>
    %85 = tpu.matmul %83, %84, %cst_28 {dimension_numbers = #tpu.dot_dimension_numbers<[1], [0], [0], [1], [0, 0, 1, 1], [], []>} : vector<16x8xf32>, vector<8x32xf32>, vector<16x32xf32> -> vector<16x32xf32>
    %86 = arith.addf %66, %85 : vector<16x32xf32>
    %c0_29 = arith.constant 0 : index
    %c0_30 = arith.constant 0 : index
    %87 = vector.load %arg4[%c0_29, %c0_30] : memref<1x32xf32, #tpu.memory_space<vmem>>, vector<1x32xf32>
    %88 = vector.broadcast %87 : vector<1x32xf32> to vector<16x32xf32>
    %89 = arith.addf %86, %88 : vector<16x32xf32>
    %c0_31 = arith.constant 0 : index
    %c0_32 = arith.constant 0 : index
    %90 = vector.load %arg6[%c0_31, %c0_32] : memref<16x32xf32, #tpu.memory_space<vmem>>, vector<16x32xf32>
    tpu.vector_store %arg6[%c0_31, %c0_32], %89 {strides = array<i32>} : memref<16x32xf32, #tpu.memory_space<vmem>>, vector<16x32xf32>,
    return
  }
}

</mosaic_0001>

<bundles_post_ra>
// kernel: tpu_custom_call.1
= control target key start
LH: loop header
LB: loop body
LE: loop exit
PB: predicated region body
PF: predicated region fallthrough
CT: control target
= control target key end

     0   :  { %11 = vsyncpa [#allocation3], 0  ;;  %s1958_s0 = inlined_call_operand.hbm [shape: f32[16,16], index: 0, kind: input, shape index: {}]   ;;  %s1959_s1 = inlined_call_operand.hbm [shape: f32[16,96], index: 1, kind: input, shape index: {}]   ;;  %s1960_s2 = inlined_call_operand.vmem [shape: f32[1,96], index: 2, kind: input, shape index: {}]   ;;  %s1961_s3 = inlined_call_operand.hbm [shape: f32[32,32], index: 3, kind: input, shape index: {}]   ;;  %s1962_s4 = inlined_call_operand.vmem [shape: f32[1,32], index: 4, kind: input, shape index: {}]   ;;  %s1963_s5 = inlined_call_operand.vmem [shape: f32[16,16], index: 5, kind: input, shape index: {}]   ;;  %s1964_s6 = inlined_call_operand.hbm [shape: f32[16,32], index: 6, kind: output, shape index: {}]  }
   0x1   :  { %12 = vsyncpa [#allocation6], 0 }
   0x2   :  { %13 = vsyncpa [#allocation4], 0  ;;  %s1721_s21 = smov [#allocation5]   ;;  %s1722_s23 = smov [#allocation2]  }
   0x3   :  { %s31_s22 = sshll.u32 %s1721_s21, 4  ;;  %s19_s24 = sshll.u32 %s1722_s23, 4  ;;  %s32_s22 = int_to_ptr.vmem [resolvable:$true] %s31_s22  ;;  %s1773_s24 = int_to_ptr.vmem [resolvable:$true] %s19_s24 }
   0x4   :  { %s1627_s27 = scalar_lea.hbm %s1959_s1, 256 }
   0x5   :  { %p1628_p0 = scmp.ne.s32.totalorder %s1959_s1, %s1627_s27  ;;  %p1631_p1 = scmp.lt.u32.totalorder %s1627_s27, %s1959_s1 }
   0x7   :  { %p1633_p2 = pnand %p1631_p1, %p1628_p0 }
   0x9   :  { %1636 = shalt.err (!%p1633_p2)
}
   0xa   :  { %s1637_s8 = scalar_lea.vmem %s32_s22, 256  ;;  %p1642_p4 = scmp.lt.s32.totalorder %s32_s22, %s32_s22 }
   0xb   :  { %p1638_p3 = scmp.ne.s32.totalorder %s32_s22, %s1637_s8  ;;  %p1643_p5 = scmp.lt.s32.totalorder %s1637_s8, %s1637_s8 }
   0xd   :  { %p1644_p6 = por %p1643_p5, %p1642_p4 }
   0xf   :  { %p1645_p7 = pnand %p1644_p6, %p1638_p3 }
  0x11   :  { %1648 = shalt.err (!%p1645_p7)
}
  0x12   :  { %s1723_s9 = smov 128   ;;  %s1724_s10 = smov 8  }
  0x13   :  { %37 = dma.hbm_to_vmem [thread:$0]  %s1959_s1, 256, %s32_s22, [#allocation6], %s1723_s9, %s1723_s9, %s1724_s10  }
  0x14   :  { %s1649_s15 = scalar_lea.hbm %s1958_s0, 256 }
  0x15   :  { %p1650_p8 = scmp.ne.s32.totalorder %s1958_s0, %s1649_s15  ;;  %p1653_p9 = scmp.lt.u32.totalorder %s1649_s15, %s1958_s0 }
  0x17   :  { %p1655_p10 = pnand %p1653_p9, %p1650_p8 }
  0x19   :  { %1658 = shalt.err (!%p1655_p10)
}
  0x1a   :  { %s1659_s20 = scalar_lea.vmem %s1773_s24, 256  ;;  %p1664_p12 = scmp.lt.s32.totalorder %s1773_s24, %s1773_s24 }
  0x1b   :  { %p1660_p11 = scmp.ne.s32.totalorder %s1773_s24, %s1659_s20  ;;  %p1665_p13 = scmp.lt.s32.totalorder %s1659_s20, %s1659_s20 }
  0x1d   :  { %p1666_p0 = por %p1665_p13, %p1664_p12 }
  0x1f   :  { %p1667_p1 = pnand %p1666_p0, %p1660_p11 }
  0x21   :  { %1670 = shalt.err (!%p1667_p1)
}
  0x22   :  { %25 = dma.hbm_to_vmem [thread:$0]  %s1958_s0, 256, %s1773_s24, [#allocation3], %s1723_s9, %s1723_s9, %s1724_s10  }
  0x23   :  { %s1725_s22 = smov [#allocation7]   ;;  %s1671_s27 = scalar_lea.hbm %s1961_s3, 512 }
  0x24   :  { %s45_s23 = sshll.u32 %s1725_s22, 4  ;;  %p1672_p2 = scmp.ne.s32.totalorder %s1961_s3, %s1671_s27  ;;  %s46_s23 = int_to_ptr.vmem [resolvable:$true] %s45_s23 }
  0x25   :  { %p1675_p3 = scmp.lt.u32.totalorder %s1671_s27, %s1961_s3 }
  0x27   :  { %p1677_p4 = pnand %p1675_p3, %p1672_p2 }
  0x29   :  { %1680 = shalt.err (!%p1677_p4)
}
  0x2a   :  { %s1681_s8 = scalar_lea.vmem %s46_s23, 512  ;;  %p1686_p6 = scmp.lt.s32.totalorder %s46_s23, %s46_s23 }
  0x2b   :  { %p1682_p5 = scmp.ne.s32.totalorder %s46_s23, %s1681_s8  ;;  %p1687_p7 = scmp.lt.s32.totalorder %s1681_s8, %s1681_s8 }
  0x2d   :  { %p1688_p8 = por %p1687_p7, %p1686_p6 }
  0x2f   :  { %p1689_p9 = pnand %p1688_p8, %p1682_p5 }
  0x31   :  { %1692 = shalt.err (!%p1689_p9)
}
  0x32   :  { %51 = dma.hbm_to_vmem [thread:$0]  %s1961_s3, 512, %s46_s23, [#allocation6], %s1723_s9, %s1723_s9, %s1724_s10  }
  0x33   :  { %1715 = dma.done.wait [#allocation3], 256  }
  0x34   :  { %1716 = vsyncadd [#allocation3], 4294967040 }
  0x35   :  { %1717 = dma.done.wait [#allocation6], 768  }
  0x36   :  { %1718 = vsyncadd [#allocation6], 4294966528  ;;  %vm76_vm0 = vcmask 130048   ;;  %v67_v0 = vld [vmem:[#allocation5] sm:$0xff]  ;;  %v68_v1 = vld [vmem:[#allocation5 + $0x8] sm:$0xff]  ;;  %vm170_vm1 = vcmask 64512  }
  0x37   :  { %v65_v2 = vld [vmem:[#allocation2] sm:$0xff]  ;;  %v1488_v3 = vpack.c.bf16 %v68_v1, %v67_v0  ;;  %v66_v4 = vld [vmem:[#allocation2 + $0x8] sm:$0xff]  ;;  %s1726_s3 = smov 96   ;;  %vm1843_vm2 = vmpackc.low %vm170_vm1, %vm170_vm1  ;;  %s1727_s16 = smov 64   ;;  %vm1300_vm3 = vcmask 261120  }
  0x38   :  { %1409 = vmatprep.mubr.msk.f32.mxu0 %vm76_vm0, %v65_v2  ;;  %v1321_v5 = vld [vmem:[%s1960_s2] ss:$0 sm:$0xff]  ;;  %v1856_v16 = vld [vmem:[%s1963_s5 + $0x8] sm:$0xff]  ;;  %s1728_s17 = smov 88   ;;  %s1730_s18 = smov 80  }
  0x39   :  { %1489 = vmatprep.subr.bf16.mxu0 %v1488_v3  ;;  %v1861_v17 = vld [vmem:[%s1963_s5] sm:$0xff]  ;;  %s1729_s5 = smov 120   ;;  %s1731_s19 = smov 112  }
  0x3a   :  { %1491 = vmatpush3.bf16.msra.mxu0 %v1488_v3  ;;  %s1732_s20 = smov 56   ;;  %s1733_s1 = smov 72  }
  0x3b   :  { %s1734_s21 = smov 104   ;;  %s1735_s22 = smov 48  }
  0x3c   :  { %s1736_s23 = smov 40   ;;  %s1737_s27 = smov [#allocation8]  }
  0x3d   :  { %1410 = vmatmul.mubr.msk.f32.vlgmr.msra.gmra.mrb[0].mxu0 %vm76_vm0, %v66_v4  ;;  %s1308_s28 = sshll.u32 %s1737_s27, 4  ;;  %s1309_s28 = int_to_ptr.vmem [resolvable:$true] %s1308_s28 }
  0x3e   :  { %s1693_s29 = scalar_lea.vmem %s1309_s28, 256  ;;  %p1698_p11 = scmp.lt.s32.totalorder %s1309_s28, %s1309_s28 }
  0x3f   :  { %p1694_p10 = scmp.ne.s32.totalorder %s1309_s28, %s1693_s29  ;;  %p1699_p12 = scmp.lt.s32.totalorder %s1693_s29, %s1693_s29 }
  0x41   :  { %p1700_p13 = por %p1699_p12, %p1698_p11 }
  0x43   :  { %p1701_p0 = pnand %p1700_p13, %p1694_p10 }
 0x110   :  { %v1411_v6 = vpop.f32.mrb[0].mxu0 }
 0x111   :  { %v1830_v7 = vadd.f32 %v1411_v6, %v1321_v5  ;;  %v149_v8 = vpop.f32.mrb[1].mxu0 }
 0x112   :  { %v1832_v9 = vadd.f32 %v1321_v5, %v149_v8 }
 0x114   :  { %1416 = vmatprep.mubr.msk.f32.mxu1 %vm170_vm1, %v1832_v9  ;;  %v1838_v10 = vpack.i.bf16 %v1830_v7, %v1832_v9 }
 0x116   :  { %1556 = vrot.lane.b32.xlu0 %v1838_v10, %s1726_s3 }
 0x188   :  { %v1557_v11 = vpop.permute.xlu0 %1556 }
 0x189   :  { %v1559_v12 = vunpack.i.h.bf16 %v1557_v11  ;;  %v1558_v13 = vunpack.i.l.bf16 %v1557_v11 }
 0x18b   :  { %v1492_v15 = vpack.c.bf16 %v1559_v12, %v1558_v13 }
 0x18d   :  { %1494 = vmatprep.subr.msk.bf16.mxu1 %vm1843_vm2, %v1492_v15 }
 0x18e   :  { %1497 = vmatpush3.bf16.xpose.msk.msra.mxu1 %vm1843_vm2, %v1492_v15 }
 0x195   :  { %1417 = vmatmul.mubr.msk.f32.vlgmr.msra.gmra.mrb[0].mxu1 %vm170_vm1, %v1830_v7 }
 0x268   :  { %v1418_v18 = vpop.f32.mrb[0].mxu1 }
 0x269   :  { %v251_v19 = vadd.f32 %v1418_v18, %v1856_v16  ;;  %v245_v20 = vpop.f32.mrb[1].mxu1 }
 0x26a   :  { %v246_v21 = vadd.f32 %v245_v20, %v1861_v17 }
 0x26b   :  { %v257_v22 = vsel %vm76_vm0, %v251_v19, -inf }
 0x26c   :  { %258 = vmax.xlane.f32.xlu1 %v257_v22  ;;  %v254_v23 = vsel %vm76_vm0, %v246_v21, -inf }
 0x26d   :  { %255 = vmax.xlane.f32.xlu0 %v254_v23 }
 0x27d   :  { %1561 = vrot.lane.b32.xlu1 %v1838_v10, %s1727_s16 }
 0x281   :  { %1566 = vrot.lane.b32.xlu1 %v1838_v10, %s1728_s17 }
 0x283   :  { %365 = vrot.lane.b32.xlu0 %v1830_v7, %s1729_s5 }
 0x2f9   :  { %v259_v24 = vpop.xlane.xlu1 %258 }
 0x2fa   :  { %v261_v25 = vsub.f32 %v251_v19, %v259_v24  ;;  %v256_v26 = vpop.xlane.xlu0 %255 }
 0x2fb   :  { %v260_v27 = vsub.f32 %v246_v21, %v256_v26 }
 0x2fc   :  { %v264_v28 = vmul.f32 1.442695, %v261_v25 }
 0x2fd   :  { %v262_v29 = vmul.f32 1.442695, %v260_v27  ;;  %v1562_v30 = vpop.permute.xlu1 %1561 }
 0x2fe   :  { %1595 = vpow2.f32 %v264_v28  ;;  %v1564_v31 = vunpack.i.h.bf16 %v1562_v30  ;;  %v1563_v32 = vunpack.i.l.bf16 %v1562_v30  ;;  %v366_v53 = vpop.permute.xlu0 %365 }
 0x2ff   :  { %1597 = vpow2.f32 %v262_v29 }
 0x300   :  { %v1498_v33 = vpack.c.bf16 %v1564_v31, %v1563_v32 }
 0x301   :  { %v1567_v34 = vpop.permute.xlu1 %1566 }
 0x302   :  { %v1569_v35 = vunpack.i.h.bf16 %v1567_v34  ;;  %v1568_v36 = vunpack.i.l.bf16 %v1567_v34  ;;  %1499 = vmatprep.subr.bf16.mxu0 %v1498_v33 }
 0x303   :  { %1501 = vmatpush3.bf16.msra.mxu0 %v1498_v33 }
 0x304   :  { %v1502_v37 = vpack.c.bf16 %v1569_v35, %v1568_v36 }
 0x306   :  { %1504 = vmatprep.subr.msk.bf16.mxu0 %vm1843_vm2, %v1502_v37 }
 0x308   :  { %v1596_v38 = vpop.eup %1595 }
 0x309   :  { %v269_v39 = vsel %vm76_vm0, %v1596_v38, 0.0  ;;  %v1598_v40 = vpop.eup %1597 }
 0x30a   :  { %270 = vadd.xlane.f32.xlu1 %v269_v39  ;;  %v266_v41 = vsel %vm76_vm0, %v1598_v40, 0.0 }
 0x30e   :  { %267 = vadd.xlane.f32.xlu1 %v266_v41 }
 0x31f   :  { %363 = vrot.lane.b32.xlu1 %v1832_v9, %s1729_s5 }
 0x323   :  { %1571 = vrot.lane.b32.xlu1 %v1838_v10, %s1730_s18 }
 0x327   :  { %725 = vrot.lane.b32.xlu1 %v1832_v9, %s1731_s19 }
 0x32b   :  { %727 = vrot.lane.b32.xlu1 %v1830_v7, %s1731_s19 }
 0x397   :  { %v271_v42 = vpop.xlane.xlu1 %270 }
 0x398   :  { %1599 = vrcp.f32 %v271_v42 }
 0x39b   :  { %v268_v43 = vpop.xlane.xlu1 %267 }
 0x39c   :  { %1601 = vrcp.f32 %v268_v43 }
 0x39f   :  { %v364_v44 = vpop.permute.xlu1 %363 }
 0x3a2   :  { %v1600_v46 = vpop.eup %1599 }
 0x3a3   :  { %v1572_v45 = vpop.permute.xlu1 %1571  ;;  %v275_v51 = vmul.f32 %v1600_v46, %v1596_v38 }
 0x3a4   :  { %v1574_v48 = vunpack.i.h.bf16 %v1572_v45  ;;  %v1573_v49 = vunpack.i.l.bf16 %v1572_v45  ;;  %v160_v45 = vld [vmem:[#allocation7] sm:$0xff] }
 0x3a6   :  { %v1602_v47 = vpop.eup %1601  ;;  %v1512_v52 = vpack.c.bf16 %v1574_v48, %v1573_v49 }
 0x3a7   :  { %v274_v50 = vmul.f32 %v1602_v47, %v1598_v40  ;;  %v726_v54 = vpop.permute.xlu1 %725 }
 0x3a9   :  { %1423 = vmatprep.mubr.msk.f32.mxu0 %vm76_vm0, %v274_v50 }
 0x3aa   :  { %1424 = vmatmul.mubr.msk.f32.vlgmr.msra.gmra.mrb[2].mxu0 %vm76_vm0, %v275_v51 }
 0x3ab   :  { %1507 = vmatpush3.bf16.xpose.msk.msra.mxu0 %vm1843_vm2, %v1502_v37  ;;  %1430 = vmatprep.mubr.msk.f32.mxu0 %vm170_vm1, %v364_v44  ;;  %v728_v55 = vpop.permute.xlu1 %727  ;;  %v161_v44 = vld [vmem:[#allocation7 + $0x8] sm:$0xff] }
 0x3ac   :  { %1514 = vmatprep.subr.msk.bf16.mxu0 %vm1843_vm2, %v1512_v52 }
 0x3b2   :  { %1431 = vmatmul.mubr.msk.f32.vlgmr.msra.gmra.mrb[4].mxu0 %vm170_vm1, %v366_v53 }
 0x3b3   :  { %1517 = vmatpush3.bf16.xpose.msk.msra.mxu0 %vm1843_vm2, %v1512_v52  ;;  %1454 = vmatprep.mubr.msk.f32.mxu0 %vm170_vm1, %v726_v54 }
 0x3ba   :  { %1455 = vmatmul.mubr.msk.f32.vlgmr.msra.gmra.mrb[6].mxu0 %vm170_vm1, %v728_v55 }
 0x47d   :  { %v1890_v56 = vpop.f32.mrb[2].mxu0 }
 0x47e   :  { %v1892_v57 = vpop.f32.mrb[3].mxu0 }
 0x485   :  { %v1432_v58 = vpop.f32.mrb[4].mxu0 }
 0x486   :  { %v451_v59 = vadd.f32 %v1432_v58, %v1856_v16  ;;  %v445_v60 = vpop.f32.mrb[5].mxu0 }
 0x487   :  { %v446_v61 = vadd.f32 %v445_v60, %v1861_v17 }
 0x488   :  { %v457_v62 = vsel %vm76_vm0, %v451_v59, -inf }
 0x489   :  { %458 = vmax.xlane.f32.xlu0 %v457_v62  ;;  %v454_v63 = vsel %vm76_vm0, %v446_v61, -inf }
 0x48a   :  { %455 = vmax.xlane.f32.xlu1 %v454_v63 }
 0x48d   :  { %v1456_v0 = vpop.f32.mrb[6].mxu0 }
 0x48e   :  { %v807_v1 = vpop.f32.mrb[7].mxu0  ;;  %v813_v20 = vadd.f32 %v1456_v0, %v1856_v16 }
 0x48f   :  { %v808_v18 = vadd.f32 %v807_v1, %v1861_v17 }
 0x490   :  { %v819_v21 = vsel %vm76_vm0, %v813_v20, -inf }
 0x491   :  { %v816_v19 = vsel %vm76_vm0, %v808_v18, -inf }
 0x516   :  { %v459_v2 = vpop.xlane.xlu0 %458 }
 0x517   :  { %v461_v3 = vsub.f32 %v451_v59, %v459_v2  ;;  %v456_v4 = vpop.xlane.xlu1 %455 }
 0x518   :  { %v460_v5 = vsub.f32 %v446_v61, %v456_v4 }
 0x519   :  { %v464_v6 = vmul.f32 1.442695, %v461_v3 }
 0x51a   :  { %v462_v8 = vmul.f32 1.442695, %v460_v5 }
 0x51b   :  { %1603 = vpow2.f32 %v464_v6 }
 0x51c   :  { %1605 = vpow2.f32 %v462_v8 }
 0x525   :  { %v1604_v11 = vpop.eup %1603 }
 0x526   :  { %v1606_v12 = vpop.eup %1605  ;;  %v469_v13 = vsel %vm76_vm0, %v1604_v11, 0.0 }
 0x527   :  { %470 = vadd.xlane.f32.xlu0 %v469_v13  ;;  %v466_v15 = vsel %vm76_vm0, %v1606_v12, 0.0 }
 0x528   :  { %467 = vadd.xlane.f32.xlu1 %v466_v15 }
 0x539   :  { %1576 = vrot.lane.b32.xlu1 %v1838_v10, %s1732_s20 }
 0x53d   :  { %1581 = vrot.lane.b32.xlu0 %v1838_v10, %s1733_s1  ;;  %1008 = vrot.lane.b32.xlu1 %v1832_v9, %s1734_s21 }
 0x541   :  { %1010 = vrot.lane.b32.xlu1 %v1830_v7, %s1734_s21 }
 0x55c   :  { %817 = vmax.xlane.f32.xlu0 %v816_v19 }
 0x565   :  { %820 = vmax.xlane.f32.xlu1 %v819_v21  ;;  %v163_v21 = vld [vmem:[#allocation7 + $0x18] sm:$0xff] }
 0x576   :  { %1586 = vrot.lane.b32.xlu1 %v1838_v10, %s1735_s22 }
 0x57a   :  { %1591 = vrot.lane.b32.xlu1 %v1838_v10, %s1736_s23 }
 0x5b4   :  { %v471_v22 = vpop.xlane.xlu0 %470 }
 0x5b5   :  { %1607 = vrcp.f32 %v471_v22  ;;  %v468_v9 = vpop.xlane.xlu1 %467 }
 0x5b6   :  { %1609 = vrcp.f32 %v468_v9 }
 0x5b8   :  { %v1582_v7 = vpop.permute.xlu0 %1581 }
 0x5b9   :  { %v1584_v23 = vunpack.i.h.bf16 %v1582_v7  ;;  %v1583_v24 = vunpack.i.l.bf16 %v1582_v7  ;;  %v1577_v25 = vpop.permute.xlu1 %1576 }
 0x5ba   :  { %v1579_v26 = vunpack.i.h.bf16 %v1577_v25  ;;  %v1578_v27 = vunpack.i.l.bf16 %v1577_v25 }
 0x5bb   :  { %v1522_v28 = vpack.c.bf16 %v1584_v23, %v1583_v24 }
 0x5bc   :  { %v1508_v29 = vpack.c.bf16 %v1579_v26, %v1578_v27 }
 0x5bd   :  { %1524 = vmatprep.subr.msk.bf16.mxu0 %vm1843_vm2, %v1522_v28  ;;  %v1009_v30 = vpop.permute.xlu1 %1008 }
 0x5be   :  { %1509 = vmatprep.subr.bf16.mxu1 %v1508_v29  ;;  %1527 = vmatpush3.bf16.xpose.msk.msra.mxu0 %vm1843_vm2, %v1522_v28  ;;  %v1356_v28 = vld [vmem:[%s1962_s4] ss:$0 sm:$0xff] }
 0x5bf   :  { %v1608_v10 = vpop.eup %1607  ;;  %1473 = vmatprep.mubr.msk.f32.mxu0 %vm170_vm1, %v1009_v30  ;;  %1511 = vmatpush3.bf16.msra.mxu1 %v1508_v29 }
 0x5c0   :  { %v1610_v31 = vpop.eup %1609  ;;  %v475_v33 = vmul.f32 %v1608_v10, %v1604_v11  ;;  %1440 = vmatprep.subr.mxu1 %v161_v44 }
 0x5c1   :  { %v474_v32 = vmul.f32 %v1610_v31, %v1606_v12  ;;  %v1011_v34 = vpop.permute.xlu1 %1010 }
 0x5c3   :  { %1437 = vmatprep.mubr.msk.f32.mxu1 %vm76_vm0, %v474_v32 }
 0x5c4   :  { %1438 = vmatmul.mubr.msk.f32.vlgmr.msra.gmra.mrb[2].mxu1 %vm76_vm0, %v475_v33 }
 0x5c5   :  { %1474 = vmatmul.mubr.msk.f32.vlgmr.msra.gmra.mrb[8].mxu0 %vm170_vm1, %v1011_v34  ;;  %1441 = vmatpush3.msra.mxu1 %v161_v44 }
 0x5c6   :  { %1445 = vmatprep.subr.mxu1 %v160_v45 }
 0x5e9   :  { %v818_v35 = vpop.xlane.xlu0 %817 }
 0x5ea   :  { %v822_v36 = vsub.f32 %v808_v18, %v818_v35 }
 0x5ec   :  { %v824_v37 = vmul.f32 1.442695, %v822_v36 }
 0x5ee   :  { %1611 = vpow2.f32 %v824_v37 }
 0x5f2   :  { %v821_v14 = vpop.xlane.xlu1 %820 }
 0x5f3   :  { %v823_v38 = vsub.f32 %v813_v20, %v821_v14 }
 0x5f5   :  { %v826_v39 = vmul.f32 1.442695, %v823_v38 }
 0x5f6   :  { %v1587_v47 = vpop.permute.xlu1 %1586 }
 0x5f7   :  { %1613 = vpow2.f32 %v826_v39  ;;  %v1589_v49 = vunpack.i.h.bf16 %v1587_v47  ;;  %v1588_v50 = vunpack.i.l.bf16 %v1587_v47 }
 0x5f8   :  { %v1612_v40 = vpop.eup %1611 }
 0x5f9   :  { %v828_v41 = vsel %vm76_vm0, %v1612_v40, 0.0  ;;  %v1518_v55 = vpack.c.bf16 %v1589_v49, %v1588_v50 }
 0x5fa   :  { %829 = vadd.xlane.f32.xlu0 %v828_v41  ;;  %v1592_v62 = vpop.permute.xlu1 %1591 }
 0x5fb   :  { %v1594_v2 = vunpack.i.h.bf16 %v1592_v62  ;;  %v1593_v3 = vunpack.i.l.bf16 %v1592_v62 }
 0x601   :  { %v1614_v42 = vpop.eup %1613 }
 0x602   :  { %v831_v43 = vsel %vm76_vm0, %v1614_v42, 0.0 }
 0x603   :  { %832 = vadd.xlane.f32.xlu0 %v831_v43 }
 0x687   :  { %v830_v46 = vpop.xlane.xlu0 %829 }
 0x688   :  { %1615 = vrcp.f32 %v830_v46 }
 0x690   :  { %v833_v48 = vpop.xlane.xlu0 %832 }
 0x691   :  { %1617 = vrcp.f32 %v833_v48 }
 0x692   :  { %v1616_v61 = vpop.eup %1615 }
 0x693   :  { %v836_v1 = vmul.f32 %v1616_v61, %v1612_v40 }
 0x697   :  { %v1439_v51 = vpop.f32.mrb[2].mxu1 }
 0x698   :  { %v554_v52 = vpop.f32.mrb[3].mxu1  ;;  %v1475_v53 = vpop.f32.mrb[8].mxu0 }
 0x699   :  { %1442 = vmatprep.mubr.msk.f32.mxu1 %vm170_vm1, %v554_v52  ;;  %v1090_v54 = vpop.f32.mrb[9].mxu0  ;;  %v1096_v59 = vadd.f32 %v1475_v53, %v1856_v16 }
 0x69a   :  { %v1091_v58 = vadd.f32 %v1090_v54, %v1861_v17  ;;  %1443 = vmatmul.mubr.msk.f32.vlgmr.msra.gmra.mrb[4].mxu1 %vm170_vm1, %v1439_v51  ;;  %v162_v17 = vld [vmem:[#allocation7 + $0x10] sm:$0xff] }
 0x69b   :  { %1446 = vmatpush3.msra.mxu1 %v160_v45  ;;  %1447 = vmatprep.mubr.msk.f32.mxu1 %vm170_vm1, %v1892_v57  ;;  %v1102_v63 = vsel %vm76_vm0, %v1096_v59, -inf  ;;  %v1618_v0 = vpop.eup %1617  ;;  %v1528_v57 = vpack.c.bf16 %v1594_v2, %v1593_v3 }
 0x69c   :  { %1519 = vmatprep.subr.bf16.mxu1 %v1518_v55  ;;  %v1099_v60 = vsel %vm76_vm0, %v1091_v58, -inf  ;;  %v837_v16 = vmul.f32 %v1618_v0, %v1614_v42 }
 0x69d   :  { %1100 = vmax.xlane.f32.xlu0 %v1099_v60 }
 0x6a1   :  { %1103 = vmax.xlane.f32.xlu0 %v1102_v63 }
 0x6a2   :  { %1448 = vmatmul.mubr.msk.f32.vlgmr.msra.gmra.mrb[4].mxu1 %vm170_vm1, %v1890_v56 }
 0x6a3   :  { %1521 = vmatpush3.bf16.msra.mxu1 %v1518_v55  ;;  %1461 = vmatprep.mubr.msk.f32.mxu1 %vm76_vm0, %v836_v1 }
 0x6a4   :  { %1464 = vmatprep.subr.mxu1 %v162_v17 }
 0x6a6   :  { %1462 = vmatmul.mubr.msk.f32.vlgmr.msra.gmra.mrb[6].mxu1 %vm76_vm0, %v837_v16 }
 0x6a7   :  { %1465 = vmatpush3.msra.mxu1 %v162_v17 }
 0x6a8   :  { %1529 = vmatprep.subr.bf16.mxu1 %v1528_v57 }
 0x72a   :  { %v1101_v4 = vpop.xlane.xlu0 %1100 }
 0x72b   :  { %v1105_v5 = vsub.f32 %v1091_v58, %v1101_v4 }
 0x72d   :  { %v1107_v6 = vmul.f32 1.442695, %v1105_v5 }
 0x72e   :  { %v1104_v8 = vpop.xlane.xlu0 %1103 }
 0x72f   :  { %1619 = vpow2.f32 %v1107_v6  ;;  %v1106_v11 = vsub.f32 %v1096_v59, %v1104_v8 }
 0x731   :  { %v1109_v12 = vmul.f32 1.442695, %v1106_v11 }
 0x733   :  { %1621 = vpow2.f32 %v1109_v12 }
 0x739   :  { %v1620_v13 = vpop.eup %1619 }
 0x73a   :  { %v1111_v56 = vsel %vm76_vm0, %v1620_v13, 0.0 }
 0x73b   :  { %1112 = vadd.xlane.f32.xlu0 %v1111_v56 }
 0x73d   :  { %v1622_v15 = vpop.eup %1621 }
 0x73e   :  { %v1114_v18 = vsel %vm76_vm0, %v1622_v15, 0.0 }
 0x73f   :  { %1115 = vadd.xlane.f32.xlu0 %v1114_v18 }
 0x779   :  { %v1463_v19 = vpop.f32.mrb[6].mxu1 }
 0x77a   :  { %v916_v20 = vpop.f32.mrb[7].mxu1 }
 0x77b   :  { %1466 = vmatprep.mubr.msk.f32.mxu1 %vm170_vm1, %v916_v20 }
 0x77c   :  { %1467 = vmatmul.mubr.msk.f32.vlgmr.msra.gmra.mrb[4].mxu1 %vm170_vm1, %v1463_v19 }
 0x77d   :  { %1531 = vmatpush3.bf16.msra.mxu1 %v1528_v57 }
 0x77e   :  { %1483 = vmatprep.subr.mxu1 %v163_v21 }
 0x7c8   :  { %v1113_v22 = vpop.xlane.xlu0 %1112 }
 0x7c9   :  { %1623 = vrcp.f32 %v1113_v22 }
 0x7cc   :  { %v1116_v9 = vpop.xlane.xlu0 %1115 }
 0x7cd   :  { %1625 = vrcp.f32 %v1116_v9 }
 0x7d3   :  { %v1624_v7 = vpop.eup %1623 }
 0x7d4   :  { %v1119_v23 = vmul.f32 %v1624_v7, %v1620_v13 }
 0x7d6   :  { %1480 = vmatprep.mubr.msk.f32.mxu1 %vm76_vm0, %v1119_v23 }
 0x7d7   :  { %v1626_v24 = vpop.eup %1625 }
 0x7d8   :  { %v1120_v25 = vmul.f32 %v1626_v24, %v1622_v15 }
 0x7da   :  { %1481 = vmatmul.mubr.msk.f32.vlgmr.msra.gmra.mrb[8].mxu1 %vm76_vm0, %v1120_v25 }
 0x7db   :  { %1484 = vmatpush3.msra.mxu1 %v163_v21 }
 0x8ad   :  { %v1482_v26 = vpop.f32.mrb[8].mxu1 }
 0x8ae   :  { %v1199_v27 = vpop.f32.mrb[9].mxu1 }
 0x8af   :  { %1485 = vmatprep.mubr.msk.f32.mxu1 %vm170_vm1, %v1199_v27 }
 0x8b0   :  { %1486 = vmatmul.mubr.msk.f32.vlgmr.msra.gmra.mrb[4].mxu1 %vm170_vm1, %v1482_v26 }
 0x983   :  { %v1487_v29 = vpop.f32.mrb[4].mxu1 }
 0x984   :  { %v1299_v30 = vadd.f32 %v1487_v29, %v1356_v28  ;;  %v1280_v10 = vpop.f32.mrb[5].mxu1 }
 0x985   :  { %v1298_v31 = vadd.f32 %v1356_v28, %v1280_v10 }
 0x986   :  { %1302 = vst.msk [vmem:[#allocation8 + $0x8] sm:$0xff] %vm1300_vm3, %v1299_v30 }
 0x987   :  { %1301 = vst.msk [vmem:[#allocation8] sm:$0xff] %vm1300_vm3, %v1298_v31 }
 0x988   :  { %1704 = shalt.err (!%p1701_p0)
}
 0x989   :  { %s1705_s4 = scalar_lea.hbm %s1964_s6, 256 }
 0x98a   :  { %p1706_p1 = scmp.ne.s32.totalorder %s1964_s6, %s1705_s4  ;;  %p1709_p2 = scmp.lt.u32.totalorder %s1705_s4, %s1964_s6 }
 0x98c   :  { %p1711_p3 = pnand %p1709_p2, %p1706_p1 }
 0x98e   :  { %1714 = shalt.err (!%p1711_p3)
}
 0x98f   :  { %1314 = dma.vmem_to_hbm [thread:$0]  %s1309_s28, 256, %s1964_s6, [#allocation4], %s1723_s9, %s1723_s9, %s1724_s10  }
 0x990   :  { %1719 = dma.done.wait [#allocation4], 256  }
 0x991   :  { %1720 = vsyncadd [#allocation4], 4294967040 }
 0x992   :  { %1318 = vsyncpa [#allocation3], 1 }
 0x993   :  { %1319 = vsyncpa [#allocation6], 1 }
 0x994   :  { %1320 = vsyncpa [#allocation4], 1 }

</bundles_post_ra>
